<compile_context>
chip_gen: v7x
topology: tpu7x:2x2x1
jax: 0.10.0
libtpu: 0.0.40
codegen_flags: <defaults>
</compile_context>

<pallas_src>
import jax
import jax.numpy as jnp
from jax.experimental import pallas as pl
from jax.experimental.pallas import tpu as pltpu


def _round_up(v, m):
    return ((v + m - 1) // m) * m


def _mdn_kernel(x_ref, w_pi_ref, b_pi_ref, w_sig_ref, b_sig_ref,
                w_mu_ref, b_mu_ref, pi_ref, sigma_ref, mu_ref):
    """Fused MDN heads for one row tile.

    x_ref     : (TN, D_in)    row tile of the flattened (B*T, D_in) input
    w_*_ref   : (D_in, G|GO)  resident head weights
    b_*_ref   : (1, G|GO)     resident head biases
    pi_ref    : (TN, G)       softmax(x @ w_pi + b_pi)
    sigma_ref : (TN, GO)      softplus(x @ w_sig + b_sig) + 1e-6
    mu_ref    : (TN, GO)      x @ w_mu + b_mu
    """
    x = x_ref[...]

    # ---- pi head: narrow matmul + softmax over exactly G lanes --------------
    logits = (jnp.dot(x, w_pi_ref[...], preferred_element_type=jnp.float32)
              + b_pi_ref[...])
    m = jnp.max(logits, axis=-1, keepdims=True)
    e = jnp.exp(logits - m)
    denom = jnp.sum(e, axis=-1, keepdims=True)
    inv = pl.reciprocal(denom, approx=True)      # EUP vrcp (separate slot)
    inv = inv * (2.0 - denom * inv)              # one Newton step -> ~f32 exact
    pi_ref[...] = e * inv

    # ---- sigma head: numerically stable softplus + 1e-6 ---------------------
    s = (jnp.dot(x, w_sig_ref[...], preferred_element_type=jnp.float32)
         + b_sig_ref[...])
    sigma_ref[...] = jnp.maximum(s, 0.0) + jnp.log1p(jnp.exp(-jnp.abs(s))) + 1e-6

    # ---- mu head: plain affine ----------------------------------------------
    mu_ref[...] = (jnp.dot(x, w_mu_ref[...], preferred_element_type=jnp.float32)
                   + b_mu_ref[...])


def mdn_forward(x, params, num_gaussians, out_features, *, tile_rows=1024):
    """x: (B, T, D_in) float32.  Returns (pi, sigma, mu) matching torch MDN."""
    B, T, D_in = x.shape
    G, O = num_gaussians, out_features
    GO = G * O
    N = B * T

    w_pi, b_pi, w_sig, b_sig, w_mu, b_mu = params

    # Row tile: big enough to amortize per-step overhead, but capped so the
    # row grid has at least 2 steps (both v7x TensorCores get work) and is a
    # multiple of 8 sublanes.  Partial last block is handled by Pallas masking.
    TN = min(tile_rows, max(8, _round_up((N + 1) // 2, 8)))
    grid = (pl.cdiv(N, TN),)

    # Explicit VMEM budget: double-buffered x tile + double-buffered output
    # tiles + resident weights/biases, with 4x headroom for epilogue temps.
    width = G + 2 * GO
    vmem_bytes = 4 * (2 * TN * D_in + 2 * TN * width + 2 * (D_in + 1) * width)
    vmem_limit = int(min(max(4 * vmem_bytes, 16 * 1024 * 1024),
                         64 * 1024 * 1024))

    x2 = x.reshape(N, D_in)   # metadata-only reshape, no HBM copy

    pi, sigma, mu = pl.pallas_call(
        _mdn_kernel,
        out_shape=(
            jax.ShapeDtypeStruct((N, G), jnp.float32),
            jax.ShapeDtypeStruct((N, GO), jnp.float32),
            jax.ShapeDtypeStruct((N, GO), jnp.float32),
        ),
        grid=grid,
        in_specs=[
            pl.BlockSpec((TN, D_in), lambda i: (i, 0)),   # row tile of x
            pl.BlockSpec((D_in, G), lambda i: (0, 0)),    # resident pi weights
            pl.BlockSpec((1, G), lambda i: (0, 0)),
            pl.BlockSpec((D_in, GO), lambda i: (0, 0)),   # resident sigma weights
            pl.BlockSpec((1, GO), lambda i: (0, 0)),
            pl.BlockSpec((D_in, GO), lambda i: (0, 0)),   # resident mu weights
            pl.BlockSpec((1, GO), lambda i: (0, 0)),
        ],
        out_specs=(
            pl.BlockSpec((TN, G), lambda i: (i, 0)),
            pl.BlockSpec((TN, GO), lambda i: (i, 0)),
            pl.BlockSpec((TN, GO), lambda i: (i, 0)),
        ),
        compiler_params=pltpu.CompilerParams(
            dimension_semantics=("parallel",),    # shard rows across v7x 2 TCs
            vmem_limit_bytes=vmem_limit,
        ),
    )(x2, w_pi, b_pi, w_sig, b_sig, w_mu, b_mu)

    return (pi.reshape(B, T, G),
            sigma.reshape(B, T, G, O),
            mu.reshape(B, T, G, O))


def init_mdn_params(key, in_features, out_features, num_gaussians):
    """Deterministic synthetic init (uniform +-1/sqrt(in), like nn.Linear)."""
    G, O, D = num_gaussians, out_features, in_features
    bound = 1.0 / (D ** 0.5)
    ks = jax.random.split(key, 6)
    u = lambda k, shape: jax.random.uniform(k, shape, jnp.float32, -bound, bound)
    w_pi = u(ks[0], (D, G))
    b_pi = u(ks[1], (1, G))
    w_sig = u(ks[2], (D, G * O))
    b_sig = u(ks[3], (1, G * O))
    w_mu = u(ks[4], (D, G * O))
    b_mu = u(ks[5], (1, G * O))
    return (w_pi, b_pi, w_sig, b_sig, w_mu, b_mu)


def _reference(x, params, G, O):
    """Pure-JAX reference mirroring the PyTorch forward."""
    B, T, D = x.shape
    w_pi, b_pi, w_sig, b_sig, w_mu, b_mu = params
    x2 = x.reshape(B * T, D)
    pi = jax.nn.softmax(x2 @ w_pi + b_pi, axis=-1).reshape(B, T, G)
    sigma = (jax.nn.softplus(x2 @ w_sig + b_sig) + 1e-6).reshape(B, T, G, O)
    mu = (x2 @ w_mu + b_mu).reshape(B, T, G, O)
    return pi, sigma, mu


if __name__ == "__main__":
    B, T, D_in = 2, 8, 32
    G, O = 4, 4

    key = jax.random.PRNGKey(0)
    k_x, k_p = jax.random.split(key)
    x = jax.random.normal(k_x, (B, T, D_in), dtype=jnp.float32)
    params = init_mdn_params(k_p, D_in, O, G)

    pi, sigma, mu = mdn_forward(x, params, num_gaussians=G, out_features=O)
    jax.block_until_ready((pi, sigma, mu))

    # sanity check against pure-JAX reference
    pi_r, sigma_r, mu_r = _reference(x, params, G, O)
    assert pi.shape == (B, T, G)
    assert sigma.shape == (B, T, G, O)
    assert mu.shape == (B, T, G, O)
    assert jnp.allclose(pi, pi_r, atol=1e-5, rtol=1e-5)
    assert jnp.allclose(sigma, sigma_r, atol=1e-5, rtol=1e-5)
    assert jnp.allclose(mu, mu_r, atol=1e-5, rtol=1e-5)

    print("KERNEL_OK")
</pallas_src>

<mosaic_0001>
module attributes {stable_mosaic.version = 11 : i64} {
  func.func @_mdn_kernel(%arg0: i32, %arg1: memref<8x32xf32, #tpu.memory_space<vmem>>, %arg2: memref<32x4xf32, #tpu.memory_space<vmem>>, %arg3: memref<1x4xf32, #tpu.memory_space<vmem>>, %arg4: memref<32x16xf32, #tpu.memory_space<vmem>>, %arg5: memref<1x16xf32, #tpu.memory_space<vmem>>, %arg6: memref<32x16xf32, #tpu.memory_space<vmem>>, %arg7: memref<1x16xf32, #tpu.memory_space<vmem>>, %arg8: memref<8x4xf32, #tpu.memory_space<vmem>>, %arg9: memref<8x16xf32, #tpu.memory_space<vmem>>, %arg10: memref<8x16xf32, #tpu.memory_space<vmem>>) attributes {dimension_semantics = [#tpu.dimension_semantics<parallel>], iteration_bounds = array<i64: 2>, scalar_prefetch = 0 : i64, scratch_operands = 0 : i64, tpu.core_type = #tpu.core_type<tc>, window_params = [{transform_indices = @transform_0, window_bounds = array<i64: 8, 32>}, {pipeline_mode = #tpu.pipeline_mode<synchronous>, transform_indices = @transform_1, window_bounds = array<i64: 32, 4>}, {pipeline_mode = #tpu.pipeline_mode<synchronous>, transform_indices = @transform_2, window_bounds = array<i64: 1, 4>}, {pipeline_mode = #tpu.pipeline_mode<synchronous>, transform_indices = @transform_3, window_bounds = array<i64: 32, 16>}, {pipeline_mode = #tpu.pipeline_mode<synchronous>, transform_indices = @transform_4, window_bounds = array<i64: 1, 16>}, {pipeline_mode = #tpu.pipeline_mode<synchronous>, transform_indices = @transform_5, window_bounds = array<i64: 32, 16>}, {pipeline_mode = #tpu.pipeline_mode<synchronous>, transform_indices = @transform_6, window_bounds = array<i64: 1, 16>}, {transform_indices = @transform_7, window_bounds = array<i64: 8, 4>}, {transform_indices = @transform_8, window_bounds = array<i64: 8, 16>}, {transform_indices = @transform_9, window_bounds = array<i64: 8, 16>}]} {
    %c0 = arith.constant 0 : index
    %c0_0 = arith.constant 0 : index
    %0 = vector.load %arg1[%c0, %c0_0] : memref<8x32xf32, #tpu.memory_space<vmem>>, vector<8x32xf32>
    %c0_1 = arith.constant 0 : index
    %c0_2 = arith.constant 0 : index
    %1 = vector.load %arg2[%c0_1, %c0_2] : memref<32x4xf32, #tpu.memory_space<vmem>>, vector<32x4xf32>
    %cst = arith.constant dense<0.000000e+00> : vector<8x4xf32>
    %2 = tpu.matmul %0, %1, %cst {dimension_numbers = #tpu.dot_dimension_numbers<[1], [0], [0], [1], [0, 0, 1, 1], [], []>} : vector<8x32xf32>, vector<32x4xf32>, vector<8x4xf32> -> vector<8x4xf32>
    %c0_3 = arith.constant 0 : index
    %c0_4 = arith.constant 0 : index
    %3 = vector.load %arg3[%c0_3, %c0_4] : memref<1x4xf32, #tpu.memory_space<vmem>>, vector<1x4xf32>
    %4 = vector.broadcast %3 : vector<1x4xf32> to vector<8x4xf32>
    %5 = arith.addf %2, %4 : vector<8x4xf32>
    %cst_5 = arith.constant dense<0xFF800000> : vector<8xf32>
    %6 = vector.multi_reduction <maximumf>, %5, %cst_5 [1] : vector<8x4xf32> to vector<8xf32>
    %7 = vector.shape_cast %6 : vector<8xf32> to vector<8x1xf32>
    %8 = vector.broadcast %7 : vector<8x1xf32> to vector<8x4xf32>
    %9 = arith.subf %5, %8 : vector<8x4xf32>
    %10 = math.exp %9 : vector<8x4xf32>
    %cst_6 = arith.constant dense<0.000000e+00> : vector<8xf32>
    %11 = vector.multi_reduction <add>, %10, %cst_6 [1] : vector<8x4xf32> to vector<8xf32>
    %12 = vector.shape_cast %11 : vector<8xf32> to vector<8x1xf32>
    %13 = tpu.reciprocal %12 {approx = true} : vector<8x1xf32> -> vector<8x1xf32>
    %14 = arith.mulf %12, %13 : vector<8x1xf32>
    %cst_7 = arith.constant 2.000000e+00 : f32
    %15 = vector.broadcast %cst_7 : f32 to vector<8x1xf32>
    %16 = arith.subf %15, %14 : vector<8x1xf32>
    %17 = arith.mulf %13, %16 : vector<8x1xf32>
    %18 = vector.broadcast %17 : vector<8x1xf32> to vector<8x4xf32>
    %19 = arith.mulf %10, %18 : vector<8x4xf32>
    %c0_8 = arith.constant 0 : index
    %c0_9 = arith.constant 0 : index
    %20 = vector.load %arg8[%c0_8, %c0_9] : memref<8x4xf32, #tpu.memory_space<vmem>>, vector<8x4xf32>
    tpu.vector_store %arg8[%c0_8, %c0_9], %19 {strides = array<i32>} : memref<8x4xf32, #tpu.memory_space<vmem>>, vector<8x4xf32>,
    %c0_10 = arith.constant 0 : index
    %c0_11 = arith.constant 0 : index
    %21 = vector.load %arg4[%c0_10, %c0_11] : memref<32x16xf32, #tpu.memory_space<vmem>>, vector<32x16xf32>
    %cst_12 = arith.constant dense<0.000000e+00> : vector<8x16xf32>
    %22 = tpu.matmul %0, %21, %cst_12 {dimension_numbers = #tpu.dot_dimension_numbers<[1], [0], [0], [1], [0, 0, 1, 1], [], []>} : vector<8x32xf32>, vector<32x16xf32>, vector<8x16xf32> -> vector<8x16xf32>
    %c0_13 = arith.constant 0 : index
    %c0_14 = arith.constant 0 : index
    %23 = vector.load %arg5[%c0_13, %c0_14] : memref<1x16xf32, #tpu.memory_space<vmem>>, vector<1x16xf32>
    %24 = vector.broadcast %23 : vector<1x16xf32> to vector<8x16xf32>
    %25 = arith.addf %22, %24 : vector<8x16xf32>
    %cst_15 = arith.constant 0.000000e+00 : f32
    %26 = vector.broadcast %cst_15 : f32 to vector<8x16xf32>
    %27 = arith.maximumf %25, %26 : vector<8x16xf32>
    %28 = math.absf %25 : vector<8x16xf32>
    %cst_16 = arith.constant 0.000000e+00 : f32
    %29 = vector.broadcast %cst_16 : f32 to vector<8x16xf32>
    %30 = arith.subf %29, %28 : vector<8x16xf32>
    %31 = math.exp %30 : vector<8x16xf32>
    %32 = math.log1p %31 : vector<8x16xf32>
    %33 = arith.addf %27, %32 : vector<8x16xf32>
    %cst_17 = arith.constant 9.99999997E-7 : f32
    %34 = vector.broadcast %cst_17 : f32 to vector<8x16xf32>
    %35 = arith.addf %33, %34 : vector<8x16xf32>
    %c0_18 = arith.constant 0 : index
    %c0_19 = arith.constant 0 : index
    %36 = vector.load %arg9[%c0_18, %c0_19] : memref<8x16xf32, #tpu.memory_space<vmem>>, vector<8x16xf32>
    tpu.vector_store %arg9[%c0_18, %c0_19], %35 {strides = array<i32>} : memref<8x16xf32, #tpu.memory_space<vmem>>, vector<8x16xf32>,
    %c0_20 = arith.constant 0 : index
    %c0_21 = arith.constant 0 : index
    %37 = vector.load %arg6[%c0_20, %c0_21] : memref<32x16xf32, #tpu.memory_space<vmem>>, vector<32x16xf32>
    %cst_22 = arith.constant dense<0.000000e+00> : vector<8x16xf32>
    %38 = tpu.matmul %0, %37, %cst_22 {dimension_numbers = #tpu.dot_dimension_numbers<[1], [0], [0], [1], [0, 0, 1, 1], [], []>} : vector<8x32xf32>, vector<32x16xf32>, vector<8x16xf32> -> vector<8x16xf32>
    %c0_23 = arith.constant 0 : index
    %c0_24 = arith.constant 0 : index
    %39 = vector.load %arg7[%c0_23, %c0_24] : memref<1x16xf32, #tpu.memory_space<vmem>>, vector<1x16xf32>
    %40 = vector.broadcast %39 : vector<1x16xf32> to vector<8x16xf32>
    %41 = arith.addf %38, %40 : vector<8x16xf32>
    %c0_25 = arith.constant 0 : index
    %c0_26 = arith.constant 0 : index
    %42 = vector.load %arg10[%c0_25, %c0_26] : memref<8x16xf32, #tpu.memory_space<vmem>>, vector<8x16xf32>
    tpu.vector_store %arg10[%c0_25, %c0_26], %41 {strides = array<i32>} : memref<8x16xf32, #tpu.memory_space<vmem>>, vector<8x16xf32>,
    return
  }
  func.func @transform_0(%arg0: i32) -> (i32, i32) {
    %c0_i32 = arith.constant 0 : i32
    %c0_i32_0 = arith.constant 0 : i32
    return %arg0, %c0_i32 : i32, i32
  }
  func.func @transform_1(%arg0: i32) -> (i32, i32) {
    %c0_i32 = arith.constant 0 : i32
    %c0_i32_0 = arith.constant 0 : i32
    %c0_i32_1 = arith.constant 0 : i32
    return %c0_i32, %c0_i32_0 : i32, i32
  }
  func.func @transform_2(%arg0: i32) -> (i32, i32) {
    %c0_i32 = arith.constant 0 : i32
    %c0_i32_0 = arith.constant 0 : i32
    %c0_i32_1 = arith.constant 0 : i32
    return %c0_i32, %c0_i32_0 : i32, i32
  }
  func.func @transform_3(%arg0: i32) -> (i32, i32) {
    %c0_i32 = arith.constant 0 : i32
    %c0_i32_0 = arith.constant 0 : i32
    %c0_i32_1 = arith.constant 0 : i32
    return %c0_i32, %c0_i32_0 : i32, i32
  }
  func.func @transform_4(%arg0: i32) -> (i32, i32) {
    %c0_i32 = arith.constant 0 : i32
    %c0_i32_0 = arith.constant 0 : i32
    %c0_i32_1 = arith.constant 0 : i32
    return %c0_i32, %c0_i32_0 : i32, i32
  }
  func.func @transform_5(%arg0: i32) -> (i32, i32) {
    %c0_i32 = arith.constant 0 : i32
    %c0_i32_0 = arith.constant 0 : i32
    %c0_i32_1 = arith.constant 0 : i32
    return %c0_i32, %c0_i32_0 : i32, i32
  }
  func.func @transform_6(%arg0: i32) -> (i32, i32) {
    %c0_i32 = arith.constant 0 : i32
    %c0_i32_0 = arith.constant 0 : i32
    %c0_i32_1 = arith.constant 0 : i32
    return %c0_i32, %c0_i32_0 : i32, i32
  }
  func.func @transform_7(%arg0: i32) -> (i32, i32) {
    %c0_i32 = arith.constant 0 : i32
    %c0_i32_0 = arith.constant 0 : i32
    return %arg0, %c0_i32 : i32, i32
  }
  func.func @transform_8(%arg0: i32) -> (i32, i32) {
    %c0_i32 = arith.constant 0 : i32
    %c0_i32_0 = arith.constant 0 : i32
    return %arg0, %c0_i32 : i32, i32
  }
  func.func @transform_9(%arg0: i32) -> (i32, i32) {
    %c0_i32 = arith.constant 0 : i32
    %c0_i32_0 = arith.constant 0 : i32
    return %arg0, %c0_i32 : i32, i32
  }
}

</mosaic_0001>

<bundles_post_ra>
// kernel: tpu_custom_call.1
= control target key start
LH: loop header
LB: loop body
LE: loop exit
PB: predicated region body
PF: predicated region fallthrough
CT: control target
= control target key end

     0   :  { %s1275_s0 = inlined_call_operand.vmem [shape: f32[16,32], index: 0, kind: input, shape index: {}]   ;;  %s1276_s1 = inlined_call_operand.vmem [shape: f32[32,4], index: 1, kind: input, shape index: {}]   ;;  %s1277_s2 = inlined_call_operand.vmem [shape: f32[1,4], index: 2, kind: input, shape index: {}]   ;;  %s1278_s3 = inlined_call_operand.vmem [shape: f32[32,16], index: 3, kind: input, shape index: {}]   ;;  %s1279_s4 = inlined_call_operand.vmem [shape: f32[1,16], index: 4, kind: input, shape index: {}]   ;;  %s1280_s5 = inlined_call_operand.vmem [shape: f32[32,16], index: 5, kind: input, shape index: {}]   ;;  %s1281_s6 = inlined_call_operand.vmem [shape: f32[1,16], index: 6, kind: input, shape index: {}]   ;;  %s1282_s7 = inlined_call_operand.vmem [shape: f32[16,4], index: 7, kind: output, shape index: {0}]   ;;  %s1283_s8 = inlined_call_operand.hbm [shape: f32[16,16], index: 8, kind: output, shape index: {1}]   ;;  %s1284_s9 = inlined_call_operand.hbm [shape: f32[16,16], index: 9, kind: output, shape index: {2}]  }
   0x1   :  { %1287 = sst [smem:[#allocation8_spill]] %s1275_s0 }
   0x2   :  { %1288 = sst [smem:[#allocation9_spill]] %s1276_s1 }
   0x3   :  { %1289 = sst [smem:[#allocation10_spill]] %s1277_s2 }
   0x4   :  { %1290 = sst [smem:[#allocation11_spill]] %s1278_s3 }
   0x5   :  { %15 = vsyncpa [#allocation3], 0 }
   0x6   :  { %17 = vsyncpa [#allocation3 + $0x1], 0 }
   0x7   :  { %18 = vsyncpa [#allocation5], 0 }
   0x8   :  { %20 = vsyncpa [#allocation5 + $0x1], 0  ;;  %s1078_s30 = smov 0   ;;  %s1080_s10 = smov 0  }
   0x9   :  { %s1082_s11 = smov 0   ;;  %s1084_s12 = smov 0  }
   0xa LB: > { %s1099_s13 = sadd.s32 4294967295, %s1021_s12   ;;  %s786_s14 = sadd.s32 4294967294, %s1021_s12   ;;  %s1021_s12 = sphi %s1084_s12, %s1302_s12   ;;  %s1017_s11 = sphi %s1082_s11, %s1301_s11   ;;  %s1013_s10 = sphi %s1080_s10, %s1300_s10   ;;  %s1009_s30 = sphi %s1078_s30, %s1299_s30  }
   0xb   : > { %s1103_s15 = sadd.s32 1, %s1021_s12   ;;  %s211_s16 = sadd.s32 1, %s1017_s11 }
   0xc   : > { %s208_s17 = ssub.s32 %s1021_s12, %s1103_s15  ;;  %p221_p0 = scmp.ne.s32.totalorder %s1017_s11, %s1013_s10 }
   0xd   : > { %p209_p1 = scmp.eq.s32.totalorder %s208_s17, 0  ;;  %p222_p2 = scmp.eq.s32.totalorder %s1099_s13, 1 }
   0xe   : > { %p227_p3 = scmp.ne.s32.totalorder %s1013_s10, %s1009_s30  ;;  %p228_p4 = scmp.eq.s32.totalorder %s786_s14, 1 }
   0xf   : > { %s1114_s18 = scalar_select %p209_p1, %s1017_s11, %s211_s16  }
  0x10   : > { %p1116_p5 = por %p222_p2, %p221_p0  ;;  %p1120_p6 = por %p228_p4, %p227_p3 }
  0x11   : > { %p789_p7 = scmp.ge.s32.totalorder %s1021_s12, 1  ;;  %p297_p8 = scmp.lt.s32.totalorder %s1021_s12, 3 }
  0x13   : > { %p298_p9 = pnand %p789_p7, %p297_p8 }
  0x14   : > { %s1293_s1 = sld [smem:[#allocation9_spill]] (!%p298_p9)  ;;  %v1023_v3 = vmov (!%p298_p9), 0.0|0.0   ;;  %vm1024_vm0 = vmmov (!%p298_p9), 0   ;;  %v1025_v6 = vmov (!%p298_p9), 0.0   ;;  %p341_p10 = scmp.lt.s32.totalorder (!%p298_p9), %s1099_s13, 1  ;;  %vm361_vm1 = vcmask (!%p298_p9), 261120  }
  0x15   : > { %301 = sbr.rel (%p298_p9) target bundleno = 571 (0x23b), region = 48  ;;  %854 = vmatprep.subr.bf16.mxu0 (!%p298_p9), %v1023_v3  ;;  %829 = vmatprep.mubr.msk.f32.mxu0 (!%p298_p9), %vm1024_vm0, %v1025_v6  ;;  %s1294_s0 = sld [smem:[#allocation8_spill]] (!%p298_p9)  ;;  %v550_v14 = vld [vmem:[%s1280_s5] sm:$0xff] (!%p298_p9)  ;;  %v551_v15 = vld [vmem:[%s1280_s5 + $0x8] sm:$0xff] (!%p298_p9)  ;;  %v552_v17 = vld [vmem:[%s1280_s5 + $0x10] sm:$0xff] (!%p298_p9)  ;;  %vm435_vm2 = vcmask (!%p298_p9), 31744  }
  0x16   : > { %860 = vmatprep.subr.bf16.mxu1 (!%p298_p9), %v1023_v3  ;;  %840 = vmatprep.mubr.msk.f32.mxu1 (!%p298_p9), %vm1024_vm0, %v1025_v6  ;;  %s1295_s3 = sld [smem:[#allocation11_spill]] (!%p298_p9)  ;;  %v867_v16 = vpack.c.bf16 (!%p298_p9), %v551_v15, %v550_v14  ;;  %v553_v18 = vld [vmem:[%s1280_s5 + $0x18] sm:$0xff] (!%p298_p9)  ;;  %s1296_s2 = sld [smem:[#allocation10_spill]] (!%p298_p9)  ;;  %v796_v28 = vld [vmem:[%s1279_s4] ss:$0 sm:$0xff] (!%p298_p9)  ;;  %vm548_vm4 = vcmask (!%p298_p9), 130048  }
  0x17   : > { %v870_v20 = vpack.c.bf16 (!%p298_p9), %v553_v18, %v552_v17  ;;  %s1188_s17 = sand.u32 (!%p298_p9), 1, %s1013_s10   ;;  %v798_v51 = vld [vmem:[%s1281_s6] ss:$0 sm:$0xff] (!%p298_p9)  ;;  %s1286_s25 = sshll.u32 (!%p298_p9), %s1099_s13, 7 }
  0x18   : > { %s1202_s28 = scalar_lea.hbm (!%p298_p9), %s1283_s8, %s1286_s25  ;;  %s1026_s23 = smov (!%p298_p9), [#allocation2]  }
  0x19   : > { %s931_s24 = sshll.u32 (!%p298_p9), %s1026_s23, 4  ;;  %s932_s24 = int_to_ptr.vmem [resolvable:$false] %s931_s24 }
  0x1a   : > { %v350_v0 = vld [vmem:[%s1293_s1] sm:$0xff] (!%p298_p9)  ;;  %v351_v1 = vld [vmem:[%s1293_s1 + $0x8] sm:$0xff] (!%p298_p9)  ;;  %v352_v2 = vld [vmem:[%s1293_s1 + $0x10] sm:$0xff] (!%p298_p9) }
  0x1b   : > { %v855_v4 = vpack.c.bf16 (!%p298_p9), %v351_v1, %v350_v0  ;;  %v353_v5 = vld [vmem:[%s1293_s1 + $0x18] sm:$0xff] (!%p298_p9) }
  0x1c   : > { %v858_v7 = vpack.c.bf16 %v353_v5, %v352_v2  ;;  %s1142_s29 = scalar_select %p341_p10, %s1099_s13, 1  ;;  %v451_v9 = vld [vmem:[%s1295_s3] sm:$0xff]  ;;  %v452_v10 = vld [vmem:[%s1295_s3 + $0x8] sm:$0xff]  ;;  %v453_v11 = vld [vmem:[%s1295_s3 + $0x10] sm:$0xff] }
  0x1d   : > { %856 = vmatpush3.bf16.msra.mxu0 %v855_v4  ;;  %v861_v12 = vpack.c.bf16 %v452_v10, %v451_v9  ;;  %v454_v13 = vld [vmem:[%s1295_s3 + $0x18] sm:$0xff]  ;;  %v794_v21 = vld [vmem:[%s1296_s2] ss:$0 sm:$0xff] }
  0x1e   : > { %857 = vmatprep.subr.bf16.mxu0 %v1023_v3  ;;  %s1285_s14 = sshll.u32 %s1142_s29, 3  ;;  %v864_v19 = vpack.c.bf16 %v454_v13, %v453_v11 }
  0x1f   : > { %s344_s21 = scalar_lea.vmem %s1294_s0, %s1285_s14  ;;  %862 = vmatpush3.bf16.msra.mxu1 %v861_v12  ;;  %s637_s0 = scalar_lea.sflag [#allocation3], %s1188_s17 }
  0x20   : > { %v349_v8 = vld [vmem:[%s344_s21] sm:$0xff]  ;;  %863 = vmatprep.subr.bf16.mxu1 %v1023_v3  ;;  %s790_s21 = sshll.u32 %s1188_s17, 3 }
  0x21   : > { %859 = vmatpush3.bf16.msra.mxu0 %v858_v7  ;;  %s333_s22 = scalar_lea.vmem [#allocation2], %s790_s21  ;;  %s1204_s16 = scalar_lea.vmem [#allocation4], %s790_s21 }
  0x22   : > { %866 = vmatprep.subr.bf16.mxu0 %v1023_v3  ;;  %s658_s26 = sshll.u32 %s333_s22, 4  ;;  %s659_s26 = int_to_ptr.vmem [resolvable:$true] %s658_s26 }
  0x23   : > { %865 = vmatpush3.bf16.msra.mxu1 %v864_v19  ;;  %s927_s1 = scalar_lea.vmem %s659_s26, 128  ;;  %p934_p0 = scmp.lt.s32.totalorder %s659_s26, %s932_s24 }
  0x24   : > { %830 = vmatmul.mubr.msk.f32.vlgmr.msra.gmra.mrb[0].mxu0 %vm361_vm1, %v349_v8  ;;  %p928_p11 = scmp.ne.s32.totalorder %s659_s26, %s927_s1 }
  0x25   : > { %851 = vmatprep.mubr.msk.f32.mxu0 %vm1024_vm0, %v1025_v6  ;;  %868 = vmatpush3.bf16.msra.mxu0 %v867_v16 }
  0x26   : > { %869 = vmatprep.subr.bf16.mxu0 %v1023_v3  ;;  %841 = vmatmul.mubr.msk.f32.vlgmr.msra.gmra.mrb[0].mxu1 %vm361_vm1, %v349_v8  ;;  %p929_p12 = pnand %p928_p11, %p1116_p5 }
  0x28   : > { %p930_p13 = pneg %p929_p12 }
  0x29   : > { %871 = vmatpush3.bf16.msra.mxu0 %v870_v20 }
  0x2c   : > { %852 = vmatmul.mubr.msk.f32.vlgmr.msra.gmra.mrb[2].mxu0 %vm361_vm1, %v349_v8 }
  0xf7   : > { %v431_v22 = vpop.f32.mrb[0].mxu0 }
  0xf8   : > { %v432_v23 = vadd.f32 %v794_v21, %v431_v22  ;;  %v831_v24 = vpop.f32.mrb[1].mxu0 }
  0xf9   : > { %v528_v26 = vpop.f32.mrb[0].mxu1 }
  0xfa   : > { %v436_v25 = vsel %vm435_vm2, %v432_v23, -inf  ;;  %v842_v27 = vpop.f32.mrb[1].mxu1  ;;  %v529_v29 = vadd.f32 %v796_v28, %v528_v26 }
  0xfb   : > { %437 = vmax.xlane.f32.xlu0 %v436_v25 }
  0xfc   : > { %v533_v30 = vand.u32 2147483647, %v529_v29  ;;  %v532_v44 = vmax.f32 %v529_v29, 0.0 }
  0xfe   : > { %v534_v31 = vsub.f32 0.0, %v533_v30 }
  0xff   : > { %v627_v50 = vpop.f32.mrb[2].mxu0 }
 0x100   : > { %v535_v32 = vmul.f32 1.442695, %v534_v31  ;;  %v853_v52 = vpop.f32.mrb[3].mxu0  ;;  %v628_v53 = vadd.f32 %v798_v51, %v627_v50 }
 0x102   : > { %919 = vpow2.f32 %v535_v32  ;;  %631 = vst.msk [vmem:[%s1204_s16] sm:$0xff] %vm548_vm4, %v628_v53 }
 0x10c   : > { %v920_v33 = vpop.eup %919 }
 0x10d   : > { %v537_v34 = vadd.f32 1.0, %v920_v33  ;;  %v540_v35 = vmul.f32 -0.5, %v920_v33  ;;  %v543_v39 = vand.u32 2147483647, %v920_v33 }
 0x10f   : > { %921 = vlog2.f32 %v537_v34  ;;  %v541_v36 = vadd.f32 1.0, %v540_v35  ;;  %vm544_vm3 = vcmp.lt.f32.partialorder %v543_v39, 0.0004427343 }
 0x111   : > { %v542_v43 = vmul.f32 %v920_v33, %v541_v36 }
 0x119   : > { %v922_v37 = vpop.eup %921 }
 0x11a   : > { %v539_v42 = vmul.f32 0.6931472, %v922_v37 }
 0x11c   : > { %v545_v45 = vsel %vm544_vm3, %v542_v43, %v539_v42 }
 0x11d   : > { %v546_v46 = vadd.f32 %v545_v45, %v532_v44 }
 0x11f   : > { %v547_v47 = vadd.f32 1e-06, %v546_v46 }
 0x121   : > { %549 = vst.msk [vmem:[%s333_s22] sm:$0xff] %vm548_vm4, %v547_v47  ;;  %s933_s22 = scalar_lea.vmem %s932_s24, 256 }
 0x122   : > { %p935_p1 = scmp.lt.s32.totalorder %s933_s22, %s927_s1 }
 0x124   : > { %p936_p2 = por %p935_p1, %p934_p0 }
 0x126   : > { %p937_p3 = pnand %p936_p2, %p930_p13 }
 0x188   : > { %v438_v38 = vpop.xlane.xlu0 %437 }
 0x189   : > { %v439_v40 = vsub.f32 %v432_v23, %v438_v38 }
 0x18b   : > { %v440_v41 = vmul.f32 1.442695, %v439_v40 }
 0x18d   : > { %923 = vpow2.f32 %v440_v41 }
 0x197   : > { %v1185_v48 = vpop.eup %923 }
 0x198   : > { %v442_v49 = vsel %vm435_vm2, %v1185_v48, 0.0 }
 0x199   : > { %443 = vadd.xlane.f32.xlu0 %v442_v49 }
 0x19a   : > { %940 = shalt.err (!%p937_p3)
}
 0x19b   : > { %s941_s21 = scalar_lea.hbm %s1202_s28, 128  ;;  %s945_s23 = scalar_lea.hbm %s1283_s8, 256 }
 0x19c   : > { %p942_p4 = scmp.ne.s32.totalorder %s1202_s28, %s941_s21  ;;  %p946_p9 = scmp.lt.u32.totalorder %s1202_s28, %s1283_s8 }
 0x19d   : > { %p947_p10 = scmp.lt.u32.totalorder %s945_s23, %s941_s21  ;;  %p949_p12 = scmp.lt.u32.totalorder %s941_s21, %s1202_s28 }
 0x19e   : > { %p943_p7 = pnand %p942_p4, %p1116_p5 }
 0x19f   : > { %p948_p11 = por %p947_p10, %p946_p9 }
 0x1a0   : > { %p944_p8 = pneg %p943_p7 }
 0x1a1   : > { %p950_p13 = por %p949_p12, %p948_p11 }
 0x1a3   : > { %p951_p0 = pnand %p950_p13, %p944_p8 }
 0x1a5   : > { %954 = shalt.err (!%p951_p0)
}
 0x1a6   : > { %872 = dma.vmem_to_hbm [thread:$0]  (%p1116_p5), %s659_s26, 128, %s1202_s28, %s637_s0  }
 0x1a7   : > { %s1297_s1 = sshll.u32 %s1099_s13, 7  ;;  %s671_s27 = sshll.u32 %s1204_s16, 4  ;;  %s672_s27 = int_to_ptr.vmem [resolvable:$true] %s671_s27 }
 0x1a8   : > { %s1230_s25 = scalar_lea.hbm %s1284_s9, %s1297_s1  ;;  %s642_s21 = scalar_lea.sflag [#allocation5], %s1188_s17 }
 0x1a9   : > { %s955_s23 = scalar_lea.vmem %s672_s27, 128  ;;  %s1027_s24 = smov [#allocation4]  }
 0x1aa   : > { %p956_p1 = scmp.ne.s32.totalorder %s672_s27, %s955_s23  ;;  %s959_s2 = sshll.u32 %s1027_s24, 4  ;;  %s960_s2 = int_to_ptr.vmem [resolvable:$false] %s959_s2 }
 0x1ab   : > { %s961_s3 = scalar_lea.vmem %s960_s2, 256  ;;  %p962_p4 = scmp.lt.s32.totalorder %s672_s27, %s960_s2 }
 0x1ac   : > { %p957_p2 = pnand %p956_p1, %p1116_p5  ;;  %p963_p7 = scmp.lt.s32.totalorder %s961_s3, %s955_s23 }
 0x1ae   : > { %p958_p3 = pneg %p957_p2  ;;  %p964_p8 = por %p963_p7, %p962_p4 }
 0x1b0   : > { %p965_p9 = pnand %p964_p8, %p958_p3 }
 0x1b2   : > { %968 = shalt.err (!%p965_p9)
}
 0x1b3   : > { %s969_s0 = scalar_lea.hbm %s1230_s25, 128  ;;  %s973_s26 = scalar_lea.hbm %s1284_s9, 256 }
 0x1b4   : > { %p970_p10 = scmp.ne.s32.totalorder %s1230_s25, %s969_s0  ;;  %p974_p13 = scmp.lt.u32.totalorder %s1230_s25, %s1284_s9 }
 0x1b5   : > { %p975_p0 = scmp.lt.u32.totalorder %s973_s26, %s969_s0  ;;  %p977_p2 = scmp.lt.u32.totalorder %s969_s0, %s1230_s25 }
 0x1b6   : > { %p971_p11 = pnand %p970_p10, %p1116_p5 }
 0x1b7   : > { %p976_p1 = por %p975_p0, %p974_p13 }
 0x1b8   : > { %p972_p12 = pneg %p971_p11 }
 0x1b9   : > { %p978_p3 = por %p977_p2, %p976_p1 }
 0x1bb   : > { %p979_p4 = pnand %p978_p3, %p972_p12 }
 0x1bd   : > { %982 = shalt.err (!%p979_p4)
}
 0x1be   : > { %873 = dma.vmem_to_hbm [thread:$0]  (%p1116_p5), %s672_s27, 128, %s1230_s25, %s642_s21  }
 0x1bf   : > { %s1298_s3 = sshll.u32 %s1142_s29, 3 }
 0x1c0   : > { %s348_s22 = scalar_lea.vmem %s1282_s7, %s1298_s3 }
 0x226   : > { %v444_v54 = vpop.xlane.xlu0 %443 }
 0x227   : > { %925 = vrcp.f32 %v444_v54 }
 0x231   : > { %v926_v55 = vpop.eup %925 }
 0x232   : > { %v446_v56 = vmul.f32 %v926_v55, %v444_v54 }
 0x234   : > { %v447_v57 = vsub.f32 2.0, %v446_v56 }
 0x236   : > { %v448_v58 = vmul.f32 %v926_v55, %v447_v57 }
 0x238   : > { %v449_v59 = vmul.f32 %v1185_v48, %v448_v58 }
 0x23a   : > { %450 = vst.msk [vmem:[%s348_s22] sm:$0xff] %vm435_vm2, %v449_v59 }
 0x23b PF: > { %p883_p5 = scmp.ge.s32.totalorder %s1021_s12, 2  ;;  %s690_s19 = sand.u32 1, %s1009_s30  }
 0x23c   : > { %s691_s14 = scalar_lea.sflag [#allocation3], %s690_s19 }
 0x23d   : > { %p877_p7 = pnand %p883_p5, %p1120_p6 }
 0x23f   : > { %1000 = dma.done.wait (!%p877_p7), %s691_s14, 128  }
 0x240   : > { %1002 = vsyncadd (!%p877_p7), %s691_s14, 4294967168  ;;  %s700_s29 = scalar_lea.sflag [#allocation5], %s690_s19 }
 0x241   : > { %1004 = dma.done.wait (!%p877_p7), %s700_s29, 128  }
 0x242   : > { %1006 = vsyncadd (!%p877_p7), %s700_s29, 4294967168  ;;  %p23_p8 = scmp.ge.s32.totalorder %s1103_s15, 4   ;;  %s1299_s30 = smov %s1013_s10 }
 0x243   : > { %s1300_s10 = smov %s1017_s11  ;;  %s1301_s11 = smov %s1114_s18 }
 0x244   : > { %s1302_s12 = smov %s1103_s15  ;;  %25 = sbr.rel (!%p23_p8) target bundleno = 10 (0xa), region = 112 }
 0x24b   :  { %705 = vsyncpa [#allocation3], 1 }
 0x24c   :  { %707 = vsyncpa [#allocation3 + $0x1], 1 }
 0x24d   :  { %708 = vsyncpa [#allocation5], 1 }
 0x24e   :  { %710 = vsyncpa [#allocation5 + $0x1], 1 }

</bundles_post_ra>
